<compile_context>
chip_gen: v5e
topology: v5e:2x2
jax: 0.10.0
libtpu: 0.0.40
codegen_flags: <defaults>
</compile_context>

<pallas_src>
import math

import jax
import jax.numpy as jnp
from jax import lax
from jax.experimental import pallas as pl
from jax.experimental.pallas import tpu as pltpu


def make_mha_kernel(num_heads: int, head_size: int):
    A = num_heads * head_size

    def kernel(q_in_ref, kv_in_ref, mask_ref,
               wq_ref, bq_ref, wkv_ref, bkv_ref, wo_ref, bo_ref,
               out_ref, probs_ref, value_ref):
        x_q = q_in_ref[0]        # (Sq, Hq)
        x_kv = kv_in_ref[0]      # (Skv, Hkv)
        mask = mask_ref[0]       # (1, Skv)

        # Q projection: attention scale already folded into wq/bq offline.
        q = jnp.dot(x_q, wq_ref[...],
                    preferred_element_type=jnp.float32) + bq_ref[...]      # (Sq, A)
        # Fused K|V projection: single MXU pass for both linears.
        kv = jnp.dot(x_kv, wkv_ref[...],
                     preferred_element_type=jnp.float32) + bkv_ref[...]    # (Skv, 2A)

        # Extended attention mask: (1 - m) * -10000, broadcast over rows/heads.
        neg_mask = (jnp.float32(1.0) - mask) * jnp.float32(-10000.0)       # (1, Skv)

        Sq = x_q.shape[0]
        out_acc = jnp.zeros((Sq, A), jnp.float32)

        for h in range(num_heads):               # static loop over heads
            lo = h * head_size
            hi = lo + head_size
            qh = q[:, lo:hi]                     # (Sq, D)
            kh = kv[:, lo:hi]                    # (Skv, D)
            vh = kv[:, A + lo:A + hi]            # (Skv, D)

            # scores = qh @ kh.T  (transpose folded into dot_general, MXU)
            scores = lax.dot_general(
                qh, kh, (((1,), (1,)), ((), ())),
                preferred_element_type=jnp.float32)                        # (Sq, Skv)
            scores = scores + neg_mask

            # numerically stable softmax over the key axis
            m = jnp.max(scores, axis=-1, keepdims=True)
            e = jnp.exp(scores - m)
            s = jnp.sum(e, axis=-1, keepdims=True)
            probs = e / s                                                  # (Sq, Skv)

            # context for this head, then fold straight through the dense
            # projection's row-slice (avoids materializing concat(ctx_h)).
            ctx_h = jnp.dot(probs, vh,
                            preferred_element_type=jnp.float32)            # (Sq, D)
            out_acc = out_acc + jnp.dot(ctx_h, wo_ref[lo:hi, :],
                                        preferred_element_type=jnp.float32)

            probs_ref[0, h] = probs.astype(probs_ref.dtype)
            value_ref[0, h] = vh.astype(value_ref.dtype)

        out_ref[0] = (out_acc + bo_ref[...]).astype(out_ref.dtype)

    return kernel


def multi_head_attention(input_query, input_key_value, key_value_mask, params,
                         *, num_heads, head_size):
    B, Sq, Hq = input_query.shape
    _, Skv, Hkv = input_key_value.shape
    A = num_heads * head_size

    if key_value_mask is None:
        key_value_mask = jnp.ones((B, Skv), jnp.float32)

    # One-time algebraic folds (amortized over all calls).
    scale = 1.0 / math.sqrt(head_size)
    wq = params["wq"] * scale
    bq = params["bq"] * scale
    wkv = jnp.concatenate([params["wk"], params["wv"]], axis=1)     # (Hkv, 2A)
    bkv = jnp.concatenate([params["bk"], params["bv"]], axis=1)     # (1, 2A)

    mask3 = key_value_mask.astype(jnp.float32).reshape(B, 1, Skv)

    kernel = make_mha_kernel(num_heads, head_size)

    def whole(shape):
        n = len(shape)
        return pl.BlockSpec(shape, lambda b, _n=n: (0,) * _n)

    in_specs = [
        pl.BlockSpec((1, Sq, Hq), lambda b: (b, 0, 0)),
        pl.BlockSpec((1, Skv, Hkv), lambda b: (b, 0, 0)),
        pl.BlockSpec((1, 1, Skv), lambda b: (b, 0, 0)),
        whole(wq.shape), whole(bq.shape),
        whole(wkv.shape), whole(bkv.shape),
        whole(params["wo"].shape), whole(params["bo"].shape),
    ]
    out_specs = (
        pl.BlockSpec((1, Sq, A), lambda b: (b, 0, 0)),
        pl.BlockSpec((1, num_heads, Sq, Skv), lambda b: (b, 0, 0, 0)),
        pl.BlockSpec((1, num_heads, Skv, head_size), lambda b: (b, 0, 0, 0)),
    )
    out_shape = (
        jax.ShapeDtypeStruct((B, Sq, A), jnp.float32),
        jax.ShapeDtypeStruct((B, num_heads, Sq, Skv), jnp.float32),
        jax.ShapeDtypeStruct((B, num_heads, Skv, head_size), jnp.float32),
    )

    return pl.pallas_call(
        kernel,
        out_shape=out_shape,
        grid=(B,),
        in_specs=in_specs,
        out_specs=out_specs,
        compiler_params=pltpu.CompilerParams(
            dimension_semantics=("parallel",),       # shards across v7x's 2 TCs
            vmem_limit_bytes=32 * 1024 * 1024),
    )(input_query, input_key_value, mask3,
      wq, bq, wkv, bkv, params["wo"], params["bo"])


def init_params(key, query_hidden, kv_hidden, all_head_size):
    ks = jax.random.split(key, 8)
    s = 0.02
    return {
        "wq": s * jax.random.normal(ks[0], (query_hidden, all_head_size), jnp.float32),
        "bq": s * jax.random.normal(ks[1], (1, all_head_size), jnp.float32),
        "wk": s * jax.random.normal(ks[2], (kv_hidden, all_head_size), jnp.float32),
        "bk": s * jax.random.normal(ks[3], (1, all_head_size), jnp.float32),
        "wv": s * jax.random.normal(ks[4], (kv_hidden, all_head_size), jnp.float32),
        "bv": s * jax.random.normal(ks[5], (1, all_head_size), jnp.float32),
        "wo": s * jax.random.normal(ks[6], (all_head_size, all_head_size), jnp.float32),
        "bo": s * jax.random.normal(ks[7], (1, all_head_size), jnp.float32),
    }


def reference_forward(input_query, input_key_value, key_value_mask, params,
                      num_heads, head_size):
    B, Sq, _ = input_query.shape
    _, Skv, _ = input_key_value.shape
    A = num_heads * head_size

    q = input_query @ params["wq"] + params["bq"]
    k = input_key_value @ params["wk"] + params["bk"]
    v = input_key_value @ params["wv"] + params["bv"]

    def split(x, S):
        return x.reshape(B, S, num_heads, head_size).transpose(0, 2, 1, 3)

    qh, kh, vh = split(q, Sq), split(k, Skv), split(v, Skv)
    scores = jnp.einsum("bhqd,bhkd->bhqk", qh, kh) / math.sqrt(head_size)
    ext = (1.0 - key_value_mask)[:, None, None, :] * -10000.0
    scores = scores + ext
    probs = jax.nn.softmax(scores, axis=-1)
    ctx = jnp.einsum("bhqk,bhkd->bhqd", probs, vh)
    ctx = ctx.transpose(0, 2, 1, 3).reshape(B, Sq, A)
    out = ctx @ params["wo"] + params["bo"]
    return out, probs, vh


if __name__ == "__main__":
    # Small shapes consistent with the module's forward.
    B = 2
    S_Q = 8
    S_KV = 8
    Q_HIDDEN = 32
    KV_HIDDEN = 32
    NUM_HEADS = 2
    HEAD_SIZE = 16
    ALL_HEAD = NUM_HEADS * HEAD_SIZE

    key = jax.random.PRNGKey(0)
    k_q, k_kv, k_p = jax.random.split(key, 3)

    input_query = jax.random.normal(k_q, (B, S_Q, Q_HIDDEN), jnp.float32)
    input_key_value = jax.random.normal(k_kv, (B, S_KV, KV_HIDDEN), jnp.float32)
    key_value_mask = jnp.ones((B, S_KV), jnp.float32)
    key_value_mask = key_value_mask.at[1, 6:].set(0.0)   # mask a few KV positions

    params = init_params(k_p, Q_HIDDEN, KV_HIDDEN, ALL_HEAD)

    out, probs, value_layer = multi_head_attention(
        input_query, input_key_value, key_value_mask, params,
        num_heads=NUM_HEADS, head_size=HEAD_SIZE)
    out = jax.block_until_ready(out)

    ref_out, ref_probs, ref_value = reference_forward(
        input_query, input_key_value, key_value_mask, params,
        NUM_HEADS, HEAD_SIZE)

    assert out.shape == (B, S_Q, ALL_HEAD)
    assert probs.shape == (B, NUM_HEADS, S_Q, S_KV)
    assert value_layer.shape == (B, NUM_HEADS, S_KV, HEAD_SIZE)
    assert jnp.allclose(out, ref_out, atol=1e-4, rtol=1e-4)
    assert jnp.allclose(probs, ref_probs, atol=1e-4, rtol=1e-4)
    assert jnp.allclose(value_layer, ref_value, atol=1e-4, rtol=1e-4)

    print("KERNEL_OK")
</pallas_src>

<mosaic_0001>
module attributes {stable_mosaic.version = 11 : i64} {
  func.func @kernel(%arg0: i32, %arg1: memref<1x8x32xf32, #tpu.memory_space<vmem>>, %arg2: memref<1x8x32xf32, #tpu.memory_space<vmem>>, %arg3: memref<1x1x8xf32, #tpu.memory_space<vmem>>, %arg4: memref<32x32xf32, #tpu.memory_space<vmem>>, %arg5: memref<1x32xf32, #tpu.memory_space<vmem>>, %arg6: memref<32x64xf32, #tpu.memory_space<vmem>>, %arg7: memref<1x64xf32, #tpu.memory_space<vmem>>, %arg8: memref<32x32xf32, #tpu.memory_space<vmem>>, %arg9: memref<1x32xf32, #tpu.memory_space<vmem>>, %arg10: memref<1x8x32xf32, #tpu.memory_space<vmem>>, %arg11: memref<1x2x8x8xf32, #tpu.memory_space<vmem>>, %arg12: memref<1x2x8x16xf32, #tpu.memory_space<vmem>>) attributes {dimension_semantics = [#tpu.dimension_semantics<parallel>], iteration_bounds = array<i64: 2>, scalar_prefetch = 0 : i64, scratch_operands = 0 : i64, tpu.core_type = #tpu.core_type<tc>, window_params = [{transform_indices = @transform_0, window_bounds = array<i64: 1, 8, 32>}, {transform_indices = @transform_1, window_bounds = array<i64: 1, 8, 32>}, {transform_indices = @transform_2, window_bounds = array<i64: 1, 1, 8>}, {pipeline_mode = #tpu.pipeline_mode<synchronous>, transform_indices = @transform_3, window_bounds = array<i64: 32, 32>}, {pipeline_mode = #tpu.pipeline_mode<synchronous>, transform_indices = @transform_4, window_bounds = array<i64: 1, 32>}, {pipeline_mode = #tpu.pipeline_mode<synchronous>, transform_indices = @transform_5, window_bounds = array<i64: 32, 64>}, {pipeline_mode = #tpu.pipeline_mode<synchronous>, transform_indices = @transform_6, window_bounds = array<i64: 1, 64>}, {pipeline_mode = #tpu.pipeline_mode<synchronous>, transform_indices = @transform_7, window_bounds = array<i64: 32, 32>}, {pipeline_mode = #tpu.pipeline_mode<synchronous>, transform_indices = @transform_8, window_bounds = array<i64: 1, 32>}, {transform_indices = @transform_9, window_bounds = array<i64: 1, 8, 32>}, {transform_indices = @transform_10, window_bounds = array<i64: 1, 2, 8, 8>}, {transform_indices = @transform_11, window_bounds = array<i64: 1, 2, 8, 16>}]} {
    %c0 = arith.constant 0 : index
    %c0_0 = arith.constant 0 : index
    %c0_1 = arith.constant 0 : index
    %0 = vector.load %arg1[%c0, %c0_0, %c0_1] : memref<1x8x32xf32, #tpu.memory_space<vmem>>, vector<1x8x32xf32>
    %1 = vector.shape_cast %0 : vector<1x8x32xf32> to vector<8x32xf32>
    %c0_2 = arith.constant 0 : index
    %c0_3 = arith.constant 0 : index
    %c0_4 = arith.constant 0 : index
    %2 = vector.load %arg2[%c0_2, %c0_3, %c0_4] : memref<1x8x32xf32, #tpu.memory_space<vmem>>, vector<1x8x32xf32>
    %3 = vector.shape_cast %2 : vector<1x8x32xf32> to vector<8x32xf32>
    %c0_5 = arith.constant 0 : index
    %c0_6 = arith.constant 0 : index
    %c0_7 = arith.constant 0 : index
    %4 = vector.load %arg3[%c0_5, %c0_6, %c0_7] : memref<1x1x8xf32, #tpu.memory_space<vmem>>, vector<1x1x8xf32>
    %5 = vector.shape_cast %4 : vector<1x1x8xf32> to vector<1x8xf32>
    %c0_8 = arith.constant 0 : index
    %c0_9 = arith.constant 0 : index
    %6 = vector.load %arg4[%c0_8, %c0_9] : memref<32x32xf32, #tpu.memory_space<vmem>>, vector<32x32xf32>
    %cst = arith.constant dense<0.000000e+00> : vector<8x32xf32>
    %7 = tpu.matmul %1, %6, %cst {dimension_numbers = #tpu.dot_dimension_numbers<[1], [0], [0], [1], [0, 0, 1, 1], [], []>} : vector<8x32xf32>, vector<32x32xf32>, vector<8x32xf32> -> vector<8x32xf32>
    %c0_10 = arith.constant 0 : index
    %c0_11 = arith.constant 0 : index
    %8 = vector.load %arg5[%c0_10, %c0_11] : memref<1x32xf32, #tpu.memory_space<vmem>>, vector<1x32xf32>
    %9 = vector.broadcast %8 : vector<1x32xf32> to vector<8x32xf32>
    %10 = arith.addf %7, %9 : vector<8x32xf32>
    %c0_12 = arith.constant 0 : index
    %c0_13 = arith.constant 0 : index
    %11 = vector.load %arg6[%c0_12, %c0_13] : memref<32x64xf32, #tpu.memory_space<vmem>>, vector<32x64xf32>
    %cst_14 = arith.constant dense<0.000000e+00> : vector<8x64xf32>
    %12 = tpu.matmul %3, %11, %cst_14 {dimension_numbers = #tpu.dot_dimension_numbers<[1], [0], [0], [1], [0, 0, 1, 1], [], []>} : vector<8x32xf32>, vector<32x64xf32>, vector<8x64xf32> -> vector<8x64xf32>
    %c0_15 = arith.constant 0 : index
    %c0_16 = arith.constant 0 : index
    %13 = vector.load %arg7[%c0_15, %c0_16] : memref<1x64xf32, #tpu.memory_space<vmem>>, vector<1x64xf32>
    %14 = vector.broadcast %13 : vector<1x64xf32> to vector<8x64xf32>
    %15 = arith.addf %12, %14 : vector<8x64xf32>
    %cst_17 = arith.constant 1.000000e+00 : f32
    %16 = vector.broadcast %cst_17 : f32 to vector<1x8xf32>
    %17 = arith.subf %16, %5 : vector<1x8xf32>
    %cst_18 = arith.constant -1.000000e+04 : f32
    %18 = vector.broadcast %cst_18 : f32 to vector<1x8xf32>
    %19 = arith.mulf %17, %18 : vector<1x8xf32>
    %cst_19 = arith.constant 0.000000e+00 : f32
    %20 = vector.broadcast %cst_19 : f32 to vector<8x32xf32>
    %21 = vector.extract_strided_slice %10 {offsets = [0, 0], sizes = [8, 16], strides = [1, 1]} : vector<8x32xf32> to vector<8x16xf32>
    %22 = vector.extract_strided_slice %15 {offsets = [0, 0], sizes = [8, 16], strides = [1, 1]} : vector<8x64xf32> to vector<8x16xf32>
    %23 = vector.extract_strided_slice %15 {offsets = [0, 32], sizes = [8, 16], strides = [1, 1]} : vector<8x64xf32> to vector<8x16xf32>
    %cst_20 = arith.constant dense<0.000000e+00> : vector<8x8xf32>
    %24 = tpu.matmul %21, %22, %cst_20 {dimension_numbers = #tpu.dot_dimension_numbers<[1], [1], [0], [0], [0, 0, 1, 0], [], []>} : vector<8x16xf32>, vector<8x16xf32>, vector<8x8xf32> -> vector<8x8xf32>
    %25 = vector.broadcast %19 : vector<1x8xf32> to vector<8x8xf32>
    %26 = arith.addf %24, %25 : vector<8x8xf32>
    %cst_21 = arith.constant dense<0xFF800000> : vector<8xf32>
    %27 = vector.multi_reduction <maximumf>, %26, %cst_21 [1] : vector<8x8xf32> to vector<8xf32>
    %28 = vector.shape_cast %27 : vector<8xf32> to vector<8x1xf32>
    %29 = vector.broadcast %28 : vector<8x1xf32> to vector<8x8xf32>
    %30 = arith.subf %26, %29 : vector<8x8xf32>
    %31 = math.exp %30 : vector<8x8xf32>
    %cst_22 = arith.constant dense<0.000000e+00> : vector<8xf32>
    %32 = vector.multi_reduction <add>, %31, %cst_22 [1] : vector<8x8xf32> to vector<8xf32>
    %33 = vector.shape_cast %32 : vector<8xf32> to vector<8x1xf32>
    %34 = vector.broadcast %33 : vector<8x1xf32> to vector<8x8xf32>
    %35 = arith.divf %31, %34 : vector<8x8xf32>
    %cst_23 = arith.constant dense<0.000000e+00> : vector<8x16xf32>
    %36 = tpu.matmul %35, %23, %cst_23 {dimension_numbers = #tpu.dot_dimension_numbers<[1], [0], [0], [1], [0, 0, 1, 1], [], []>} : vector<8x8xf32>, vector<8x16xf32>, vector<8x16xf32> -> vector<8x16xf32>
    %c0_24 = arith.constant 0 : index
    %c0_25 = arith.constant 0 : index
    %37 = vector.load %arg8[%c0_24, %c0_25] : memref<32x32xf32, #tpu.memory_space<vmem>>, vector<16x32xf32>
    %cst_26 = arith.constant dense<0.000000e+00> : vector<8x32xf32>
    %38 = tpu.matmul %36, %37, %cst_26 {dimension_numbers = #tpu.dot_dimension_numbers<[1], [0], [0], [1], [0, 0, 1, 1], [], []>} : vector<8x16xf32>, vector<16x32xf32>, vector<8x32xf32> -> vector<8x32xf32>
    %39 = arith.addf %20, %38 : vector<8x32xf32>
    %c0_27 = arith.constant 0 : index
    %c0_28 = arith.constant 0 : index
    %c0_29 = arith.constant 0 : index
    %c0_30 = arith.constant 0 : index
    %40 = vector.load %arg11[%c0_27, %c0_28, %c0_29, %c0_30] : memref<1x2x8x8xf32, #tpu.memory_space<vmem>>, vector<1x1x8x8xf32>
    %41 = vector.shape_cast %40 : vector<1x1x8x8xf32> to vector<8x8xf32>
    %42 = vector.shape_cast %35 : vector<8x8xf32> to vector<1x1x8x8xf32>
    tpu.vector_store %arg11[%c0_27, %c0_28, %c0_29, %c0_30], %42 {strides = array<i32>} : memref<1x2x8x8xf32, #tpu.memory_space<vmem>>, vector<1x1x8x8xf32>,
    %c0_31 = arith.constant 0 : index
    %c0_32 = arith.constant 0 : index
    %c0_33 = arith.constant 0 : index
    %c0_34 = arith.constant 0 : index
    %43 = vector.load %arg12[%c0_31, %c0_32, %c0_33, %c0_34] : memref<1x2x8x16xf32, #tpu.memory_space<vmem>>, vector<1x1x8x16xf32>
    %44 = vector.shape_cast %43 : vector<1x1x8x16xf32> to vector<8x16xf32>
    %45 = vector.shape_cast %23 : vector<8x16xf32> to vector<1x1x8x16xf32>
    tpu.vector_store %arg12[%c0_31, %c0_32, %c0_33, %c0_34], %45 {strides = array<i32>} : memref<1x2x8x16xf32, #tpu.memory_space<vmem>>, vector<1x1x8x16xf32>,
    %46 = vector.extract_strided_slice %10 {offsets = [0, 16], sizes = [8, 16], strides = [1, 1]} : vector<8x32xf32> to vector<8x16xf32>
    %47 = vector.extract_strided_slice %15 {offsets = [0, 16], sizes = [8, 16], strides = [1, 1]} : vector<8x64xf32> to vector<8x16xf32>
    %48 = vector.extract_strided_slice %15 {offsets = [0, 48], sizes = [8, 16], strides = [1, 1]} : vector<8x64xf32> to vector<8x16xf32>
    %cst_35 = arith.constant dense<0.000000e+00> : vector<8x8xf32>
    %49 = tpu.matmul %46, %47, %cst_35 {dimension_numbers = #tpu.dot_dimension_numbers<[1], [1], [0], [0], [0, 0, 1, 0], [], []>} : vector<8x16xf32>, vector<8x16xf32>, vector<8x8xf32> -> vector<8x8xf32>
    %50 = vector.broadcast %19 : vector<1x8xf32> to vector<8x8xf32>
    %51 = arith.addf %49, %50 : vector<8x8xf32>
    %cst_36 = arith.constant dense<0xFF800000> : vector<8xf32>
    %52 = vector.multi_reduction <maximumf>, %51, %cst_36 [1] : vector<8x8xf32> to vector<8xf32>
    %53 = vector.shape_cast %52 : vector<8xf32> to vector<8x1xf32>
    %54 = vector.broadcast %53 : vector<8x1xf32> to vector<8x8xf32>
    %55 = arith.subf %51, %54 : vector<8x8xf32>
    %56 = math.exp %55 : vector<8x8xf32>
    %cst_37 = arith.constant dense<0.000000e+00> : vector<8xf32>
    %57 = vector.multi_reduction <add>, %56, %cst_37 [1] : vector<8x8xf32> to vector<8xf32>
    %58 = vector.shape_cast %57 : vector<8xf32> to vector<8x1xf32>
    %59 = vector.broadcast %58 : vector<8x1xf32> to vector<8x8xf32>
    %60 = arith.divf %56, %59 : vector<8x8xf32>
    %cst_38 = arith.constant dense<0.000000e+00> : vector<8x16xf32>
    %61 = tpu.matmul %60, %48, %cst_38 {dimension_numbers = #tpu.dot_dimension_numbers<[1], [0], [0], [1], [0, 0, 1, 1], [], []>} : vector<8x8xf32>, vector<8x16xf32>, vector<8x16xf32> -> vector<8x16xf32>
    %c16 = arith.constant 16 : index
    %c0_39 = arith.constant 0 : index
    %62 = vector.load %arg8[%c16, %c0_39] : memref<32x32xf32, #tpu.memory_space<vmem>>, vector<16x32xf32>
    %cst_40 = arith.constant dense<0.000000e+00> : vector<8x32xf32>
    %63 = tpu.matmul %61, %62, %cst_40 {dimension_numbers = #tpu.dot_dimension_numbers<[1], [0], [0], [1], [0, 0, 1, 1], [], []>} : vector<8x16xf32>, vector<16x32xf32>, vector<8x32xf32> -> vector<8x32xf32>
    %64 = arith.addf %39, %63 : vector<8x32xf32>
    %c0_41 = arith.constant 0 : index
    %c1 = arith.constant 1 : index
    %c0_42 = arith.constant 0 : index
    %c0_43 = arith.constant 0 : index
    %65 = vector.load %arg11[%c0_41, %c1, %c0_42, %c0_43] : memref<1x2x8x8xf32, #tpu.memory_space<vmem>>, vector<1x1x8x8xf32>
    %66 = vector.shape_cast %65 : vector<1x1x8x8xf32> to vector<8x8xf32>
    %67 = vector.shape_cast %60 : vector<8x8xf32> to vector<1x1x8x8xf32>
    tpu.vector_store %arg11[%c0_41, %c1, %c0_42, %c0_43], %67 {strides = array<i32>} : memref<1x2x8x8xf32, #tpu.memory_space<vmem>>, vector<1x1x8x8xf32>,
    %c0_44 = arith.constant 0 : index
    %c1_45 = arith.constant 1 : index
    %c0_46 = arith.constant 0 : index
    %c0_47 = arith.constant 0 : index
    %68 = vector.load %arg12[%c0_44, %c1_45, %c0_46, %c0_47] : memref<1x2x8x16xf32, #tpu.memory_space<vmem>>, vector<1x1x8x16xf32>
    %69 = vector.shape_cast %68 : vector<1x1x8x16xf32> to vector<8x16xf32>
    %70 = vector.shape_cast %48 : vector<8x16xf32> to vector<1x1x8x16xf32>
    tpu.vector_store %arg12[%c0_44, %c1_45, %c0_46, %c0_47], %70 {strides = array<i32>} : memref<1x2x8x16xf32, #tpu.memory_space<vmem>>, vector<1x1x8x16xf32>,
    %c0_48 = arith.constant 0 : index
    %c0_49 = arith.constant 0 : index
    %71 = vector.load %arg9[%c0_48, %c0_49] : memref<1x32xf32, #tpu.memory_space<vmem>>, vector<1x32xf32>
    %72 = vector.broadcast %71 : vector<1x32xf32> to vector<8x32xf32>
    %73 = arith.addf %64, %72 : vector<8x32xf32>
    %c0_50 = arith.constant 0 : index
    %c0_51 = arith.constant 0 : index
    %c0_52 = arith.constant 0 : index
    %74 = vector.load %arg10[%c0_50, %c0_51, %c0_52] : memref<1x8x32xf32, #tpu.memory_space<vmem>>, vector<1x8x32xf32>
    %75 = vector.shape_cast %74 : vector<1x8x32xf32> to vector<8x32xf32>
    %76 = vector.shape_cast %73 : vector<8x32xf32> to vector<1x8x32xf32>
    tpu.vector_store %arg10[%c0_50, %c0_51, %c0_52], %76 {strides = array<i32>} : memref<1x8x32xf32, #tpu.memory_space<vmem>>, vector<1x8x32xf32>,
    return
  }
  func.func @transform_0(%arg0: i32) -> (i32, i32, i32) {
    %c0_i32 = arith.constant 0 : i32
    %c0_i32_0 = arith.constant 0 : i32
    %c0_i32_1 = arith.constant 0 : i32
    return %arg0, %c0_i32, %c0_i32_0 : i32, i32, i32
  }
  func.func @transform_1(%arg0: i32) -> (i32, i32, i32) {
    %c0_i32 = arith.constant 0 : i32
    %c0_i32_0 = arith.constant 0 : i32
    %c0_i32_1 = arith.constant 0 : i32
    return %arg0, %c0_i32, %c0_i32_0 : i32, i32, i32
  }
  func.func @transform_2(%arg0: i32) -> (i32, i32, i32) {
    %c0_i32 = arith.constant 0 : i32
    %c0_i32_0 = arith.constant 0 : i32
    %c0_i32_1 = arith.constant 0 : i32
    return %arg0, %c0_i32, %c0_i32_0 : i32, i32, i32
  }
  func.func @transform_3(%arg0: i32) -> (i32, i32) {
    %c0_i32 = arith.constant 0 : i32
    %c0_i32_0 = arith.constant 0 : i32
    %c0_i32_1 = arith.constant 0 : i32
    return %c0_i32, %c0_i32_0 : i32, i32
  }
  func.func @transform_4(%arg0: i32) -> (i32, i32) {
    %c0_i32 = arith.constant 0 : i32
    %c0_i32_0 = arith.constant 0 : i32
    %c0_i32_1 = arith.constant 0 : i32
    return %c0_i32, %c0_i32_0 : i32, i32
  }
  func.func @transform_5(%arg0: i32) -> (i32, i32) {
    %c0_i32 = arith.constant 0 : i32
    %c0_i32_0 = arith.constant 0 : i32
    %c0_i32_1 = arith.constant 0 : i32
    return %c0_i32, %c0_i32_0 : i32, i32
  }
  func.func @transform_6(%arg0: i32) -> (i32, i32) {
    %c0_i32 = arith.constant 0 : i32
    %c0_i32_0 = arith.constant 0 : i32
    %c0_i32_1 = arith.constant 0 : i32
    return %c0_i32, %c0_i32_0 : i32, i32
  }
  func.func @transform_7(%arg0: i32) -> (i32, i32) {
    %c0_i32 = arith.constant 0 : i32
    %c0_i32_0 = arith.constant 0 : i32
    %c0_i32_1 = arith.constant 0 : i32
    return %c0_i32, %c0_i32_0 : i32, i32
  }
  func.func @transform_8(%arg0: i32) -> (i32, i32) {
    %c0_i32 = arith.constant 0 : i32
    %c0_i32_0 = arith.constant 0 : i32
    %c0_i32_1 = arith.constant 0 : i32
    return %c0_i32, %c0_i32_0 : i32, i32
  }
  func.func @transform_9(%arg0: i32) -> (i32, i32, i32) {
    %c0_i32 = arith.constant 0 : i32
    %c0_i32_0 = arith.constant 0 : i32
    %c0_i32_1 = arith.constant 0 : i32
    return %arg0, %c0_i32, %c0_i32_0 : i32, i32, i32
  }
  func.func @transform_10(%arg0: i32) -> (i32, i32, i32, i32) {
    %c0_i32 = arith.constant 0 : i32
    %c0_i32_0 = arith.constant 0 : i32
    %c0_i32_1 = arith.constant 0 : i32
    %c0_i32_2 = arith.constant 0 : i32
    return %arg0, %c0_i32, %c0_i32_0, %c0_i32_1 : i32, i32, i32, i32
  }
  func.func @transform_11(%arg0: i32) -> (i32, i32, i32, i32) {
    %c0_i32 = arith.constant 0 : i32
    %c0_i32_0 = arith.constant 0 : i32
    %c0_i32_1 = arith.constant 0 : i32
    %c0_i32_2 = arith.constant 0 : i32
    return %arg0, %c0_i32, %c0_i32_0, %c0_i32_1 : i32, i32, i32, i32
  }
}

</mosaic_0001>

<bundles_post_ra>
// kernel: tpu_custom_call.1
= control target key start
LH: loop header
LB: loop body
LE: loop exit
PB: predicated region body
PF: predicated region fallthrough
CT: control target
= control target key end

     0   :  { %s1953_s0 = inlined_call_operand.hbm [shape: f32[2,8,32], index: 0, kind: input, shape index: {}]   ;;  %s1954_s1 = inlined_call_operand.hbm [shape: f32[2,8,32], index: 1, kind: input, shape index: {}]   ;;  %s1955_s2 = inlined_call_operand.hbm [shape: f32[2,1,8], index: 2, kind: input, shape index: {}]   ;;  %s1956_s3 = inlined_call_operand.hbm [shape: f32[32,32], index: 3, kind: input, shape index: {}]   ;;  %s1957_s4 = inlined_call_operand.vmem [shape: f32[1,32], index: 4, kind: input, shape index: {}]   ;;  %s1958_s5 = inlined_call_operand.hbm [shape: f32[32,64], index: 5, kind: input, shape index: {}]   ;;  %s1959_s6 = inlined_call_operand.vmem [shape: f32[1,64], index: 6, kind: input, shape index: {}]   ;;  %s1960_s7 = inlined_call_operand.hbm [shape: f32[32,32], index: 7, kind: input, shape index: {}]   ;;  %s1961_s8 = inlined_call_operand.vmem [shape: f32[1,32], index: 8, kind: input, shape index: {}]   ;;  %s1962_s9 = inlined_call_operand.hbm [shape: f32[2,8,32], index: 9, kind: output, shape index: {0}]   ;;  %s1963_s10 = inlined_call_operand.hbm [shape: f32[2,2,8,8], index: 10, kind: output, shape index: {1}]   ;;  %s1964_s11 = inlined_call_operand.hbm [shape: f32[2,2,8,16], index: 11, kind: output, shape index: {2}]  }
   0x1   :  { %1980 = sst [smem:[#allocation28_spill]] %s1954_s1 }
   0x2   :  { %1981 = sst [smem:[#allocation29_spill]] %s1956_s3 }
   0x3   :  { %1982 = sst [smem:[#allocation30_spill]] %s1961_s8 }
   0x4   :  { %1983 = sst [smem:[#allocation31_spill]] %s1962_s9 }
   0x5   :  { %1984 = sst [smem:[#allocation32_spill]] %s1963_s10 }
   0x6   :  { %1985 = sst [smem:[#allocation33_spill]] %s1964_s11 }
   0x7   :  { %17 = vsyncpa [#allocation3], 0 }
   0x8   :  { %19 = vsyncpa [#allocation3 + $0x1], 0 }
   0x9   :  { %20 = vsyncpa [#allocation6], 0 }
   0xa   :  { %22 = vsyncpa [#allocation6 + $0x1], 0 }
   0xb   :  { %23 = vsyncpa [#allocation9], 0 }
   0xc   :  { %24 = vsyncpa [#allocation12], 0 }
   0xd   :  { %25 = vsyncpa [#allocation4], 0 }
   0xe   :  { %27 = vsyncpa [#allocation4 + $0x1], 0 }
   0xf   :  { %28 = vsyncpa [#allocation15], 0 }
  0x10   :  { %30 = vsyncpa [#allocation15 + $0x1], 0  ;;  %s1641_s17 = smov 0   ;;  %s1643_s18 = smov 0  }
  0x11   :  { %s1645_s19 = smov 0   ;;  %s1647_s20 = smov 0  }
  0x12 LB: > { %1986 = sst [smem:[#allocation23_spill]] %s1557_s17  ;;  %s1665_s24 = sadd.s32 4294967295, %s1569_s20   ;;  %s1569_s20 = sphi %s1647_s20, %s2014_s20   ;;  %s1565_s19 = sphi %s1645_s19, %s2016_s19   ;;  %s1561_s18 = sphi %s1643_s18, %s2018_s18   ;;  %s1557_s17 = sphi %s1641_s17, %s2017_s17  }
  0x13   : > { %1987 = sst [smem:[#allocation24_spill]] %s1565_s19  ;;  %p1094_p0 = scmp.ge.s32.totalorder %s1569_s20, 1 }
  0x14   : > { %s1988_s3 = sld [smem:[#allocation29_spill]]  ;;  %p1979_p1 = scmp.eq.s32.totalorder %s1665_s24, 0 }
  0x15   : > { %p323_p2 = scmp.lt.s32.totalorder %s1569_s20, 3  ;;  %s1571_s26 = smov [#allocation8]  }
  0x16   : > { %s336_s27 = sshll.u32 %s1571_s26, 4  ;;  %s1965_s29 = smov 128   ;;  %s337_s27 = int_to_ptr.vmem [resolvable:$true] %s336_s27 }
  0x17   : > { %p1670_p3 = pnand %p1094_p0, %p323_p2  ;;  %s1968_s30 = smov 8  }
  0x18   : > { %s1967_s12 = sadd.s32 4294967294, %s1569_s20   ;;  %s1690_s13 = sadd.s32 1, %s1569_s20  }
  0x19   : > { %p1160_p4 = pneg %p1670_p3  ;;  %1991 = sst [smem:[#allocation25_spill]] %s1690_s13 }
  0x1a   : > { %s334_s23 = sshll.u32 %s1988_s3, 4  ;;  %s43_s14 = sadd.s32 1, %s1565_s19  ;;  %s335_s23 = int_to_ptr.hbm [resolvable:$true] %s334_s23 }
  0x1b   : > { %p1679_p6 = pnand %p1160_p4, %p1979_p1  ;;  %s40_s15 = ssub.s32 %s1569_s20, %s1690_s13 }
  0x1c   : > { %p50_p7 = scmp.ne.s32.totalorder %s1565_s19, %s1561_s18  ;;  %p41_p8 = scmp.eq.s32.totalorder %s40_s15, 0 }
  0x1d   : > { %1163 = dma.hbm_to_vmem [thread:$0]  (!%p1679_p6), %s335_s23, 512, %s337_s27, [#allocation9], %s1965_s29, %s1965_s29, %s1968_s30  }
  0x1e   : > { %p51_p9 = scmp.eq.s32.totalorder %s1569_s20, 0  ;;  %p56_p10 = scmp.ne.s32.totalorder %s1561_s18, %s1557_s17 }
  0x1f   : > { %p258_p11 = scmp.eq.s32.totalorder %s1665_s24, 1  ;;  %p264_p2 = scmp.eq.s32.totalorder %s1967_s12, 1 }
  0x20   : > { %s1702_s16 = scalar_select %p41_p8, %s1565_s19, %s43_s14  }
  0x21   : > { %p52_p12 = por %p51_p9, %p50_p7  ;;  %p1706_p13 = por %p1979_p1, %p56_p10 }
  0x22   : > { %1992 = sst [smem:[#allocation26_spill]] %s1702_s16  ;;  %p1710_p0 = por %p258_p11, %p50_p7 }
  0x23   : > { %p1193_p4 = scmp.lt.s32.totalorder %s1569_s20, 2  ;;  %s1718_s23 = sand.u32 1, %s1565_s19  }
  0x24   : > { %p1720_p5 = por %p264_p2, %p56_p10  ;;  %s1978_s27 = sshll.u32 %s1718_s23, 3 }
  0x25   : > { %s1100_s14 = sshll.u32 %s1569_s20, 3  ;;  %p1726_p8 = pnand %p1193_p4, %p52_p12 }
  0x26   : > { %s1995_s26 = scalar_select %p1720_p5, 1, 0 }
  0x27   : > { %s406_s29 = sand.u32 1, %s1569_s20   ;;  %s1998_s1 = sld [smem:[#allocation28_spill]] }
  0x28   : > { %1996 = sst [smem:[#allocation27_spill]] %s1995_s26  ;;  %s410_s16 = scalar_lea.vmem [#allocation5], %s1978_s27 }
  0x29   : > { %s418_s19 = sshll.u32 %s410_s16, 4  ;;  %s351_s8 = sshll.u32 %s1958_s5, 4  ;;  %s419_s19 = int_to_ptr.vmem [resolvable:$true] %s418_s19  ;;  %s352_s8 = int_to_ptr.hbm [resolvable:$true] %s351_s8 }
  0x2a   : > { %s1741_s9 = scalar_lea.sflag [#allocation6], %s406_s29  ;;  %p1285_p9 = pneg %p1726_p8 }
  0x2d   : > { %s414_s3 = scalar_lea.hbm %s1998_s1, %s1100_s14  ;;  %s1288_s12 = scalar_lea.hbm %s1998_s1, 16 }
  0x2e   : > { %s416_s13 = sshll.u32 %s414_s3, 4  ;;  %s417_s13 = int_to_ptr.hbm [resolvable:$true] %s416_s13 }
  0x2f   : > { %s1281_s11 = sshra.s32 %s417_s13, 4  ;;  %s1282_s11 = int_to_ptr.hbm [resolvable:$true] %s1281_s11 }
  0x30   : > { %s1283_s10 = scalar_lea.hbm %s1282_s11, 8  ;;  %p1289_p12 = scmp.lt.s32.totalorder %s1282_s11, %s1998_s1 }
  0x31   : > { %p1284_p7 = scmp.ne.s32.totalorder %s1282_s11, %s1283_s10  ;;  %p1290_p2 = scmp.lt.s32.totalorder %s1288_s12, %s1283_s10 }
  0x33   : > { %p1286_p10 = pnand %p1285_p9, %p1284_p7  ;;  %p1291_p4 = por %p1290_p2, %p1289_p12 }
  0x35   : > { %p1287_p11 = pneg %p1286_p10 }
  0x37   : > { %p1292_p1 = pnand %p1291_p4, %p1287_p11 }
  0x39   : > { %1295 = shalt.err (!%p1292_p1)
}
  0x3a   : > { %1176 = dma.hbm_to_vmem [thread:$0]  (!%p1726_p8), %s417_s13, 128, %s419_s19, %s1741_s9  }
  0x3b   : > { %s1574_s17 = smov [#allocation10]   ;;  %s368_s11 = sshll.u32 %s1960_s7, 4  ;;  %s369_s11 = int_to_ptr.hbm [resolvable:$true] %s368_s11 }
  0x3c   : > { %s353_s29 = sshll.u32 %s1574_s17, 4  ;;  %s1999_s10 = smov 8   ;;  %s354_s29 = int_to_ptr.vmem [resolvable:$true] %s353_s29 }
  0x3d   : > { %s2000_s27 = smov 128   ;;  %s1575_s3 = smov [#allocation11]  }
  0x3e   : > { %1166 = dma.hbm_to_vmem [thread:$0]  (!%p1679_p6), %s352_s8, 512, %s354_s29, [#allocation9], %s2000_s27, %s2000_s27, %s1999_s10  }
  0x3f   : > { %s370_s12 = sshll.u32 %s1575_s3, 4  ;;  %s395_s16 = scalar_lea.hbm %s1953_s0, %s1100_s14  ;;  %s371_s12 = int_to_ptr.vmem [resolvable:$true] %s370_s12 }
  0x40   : > { %1169 = dma.hbm_to_vmem [thread:$0]  (!%p1679_p6), %s369_s11, 512, %s371_s12, [#allocation12], %s2000_s27, %s2000_s27, %s1999_s10  }
  0x41   : > { %s397_s17 = sshll.u32 %s395_s16, 4  ;;  %s2001_s26 = sshll.u32 %s1718_s23, 3  ;;  %s398_s17 = int_to_ptr.hbm [resolvable:$true] %s397_s17 }
  0x42   : > { %s391_s30 = scalar_lea.vmem [#allocation2], %s2001_s26  ;;  %s388_s8 = scalar_lea.sflag [#allocation3], %s1718_s23 }
  0x43   : > { %s399_s1 = sshll.u32 %s391_s30, 4  ;;  %s1371_s29 = sshra.s32 %s398_s17, 4  ;;  %s400_s1 = int_to_ptr.vmem [resolvable:$true] %s399_s1  ;;  %s1372_s29 = int_to_ptr.hbm [resolvable:$true] %s1371_s29 }
  0x44   : > { %s1373_s3 = scalar_lea.hbm %s1372_s29, 8  ;;  %s1378_s19 = scalar_lea.hbm %s1953_s0, 16 }
  0x45   : > { %p1374_p1 = scmp.ne.s32.totalorder %s1372_s29, %s1373_s3  ;;  %p1379_p6 = scmp.lt.s32.totalorder %s1372_s29, %s1953_s0 }
  0x46   : > { %p1380_p11 = scmp.lt.s32.totalorder %s1378_s19, %s1373_s3 }
  0x47   : > { %p1376_p7 = pnand %p1374_p1, %p1285_p9 }
  0x48   : > { %p1381_p12 = por %p1380_p11, %p1379_p6 }
  0x49   : > { %p1377_p10 = pneg %p1376_p7 }
  0x4b   : > { %p1382_p2 = pnand %p1381_p12, %p1377_p10 }
  0x4d   : > { %1385 = shalt.err (!%p1382_p2)
}
  0x4e   : > { %1173 = dma.hbm_to_vmem [thread:$0]  (!%p1726_p8), %s398_s17, 128, %s400_s1, %s388_s8  }
  0x4f   : > { %s431_s13 = scalar_lea.hbm %s1955_s2, %s1569_s20  ;;  %s428_s26 = scalar_lea.vmem [#allocation7], %s1718_s23 }
  0x50   : > { %s433_s16 = sshll.u32 %s431_s13, 4  ;;  %s435_s30 = sshll.u32 %s428_s26, 4  ;;  %s434_s16 = int_to_ptr.hbm [resolvable:$true] %s433_s16  ;;  %s436_s30 = int_to_ptr.vmem [resolvable:$true] %s435_s30 }
  0x51   : > { %s1401_s29 = sshra.s32 %s434_s16, 4  ;;  %s1408_s1 = scalar_lea.hbm %s1955_s2, 2  ;;  %s1402_s29 = int_to_ptr.hbm [resolvable:$true] %s1401_s29 }
  0x52   : > { %s1403_s3 = scalar_lea.hbm %s1402_s29, 1  ;;  %p1409_p10 = scmp.lt.s32.totalorder %s1402_s29, %s1955_s2 }
  0x53   : > { %p1404_p4 = scmp.ne.s32.totalorder %s1402_s29, %s1403_s3  ;;  %p1410_p6 = scmp.lt.s32.totalorder %s1408_s1, %s1403_s3 }
  0x55   : > { %p1406_p1 = pnand %p1404_p4, %p1285_p9  ;;  %p1411_p11 = por %p1410_p6, %p1409_p10 }
  0x57   : > { %p1407_p7 = pneg %p1406_p1 }
  0x59   : > { %p1412_p12 = pnand %p1411_p11, %p1407_p7 }
  0x5b   : > { %1415 = shalt.err (!%p1412_p12)
}
  0x5c   : > { %1179 = dma.hbm_to_vmem [thread:$0]  (!%p1726_p8), %s434_s16, 16, %s436_s30, %s1741_s9  }
  0x5d   : > { %444 = sbr.rel (%p1670_p3) target bundleno = 1316 (0x524), region = 56  ;;  %s1809_s23 = sand.u32 (!%p1670_p3), 1, %s1561_s18  }
  0x5e   : > { %s1812_s19 = sshll.u32 (!%p1670_p3), %s1809_s23, 3  ;;  %s447_s11 = scalar_lea.sflag (!%p1670_p3), [#allocation3], %s1809_s23 }
  0x5f   : > { %s450_s10 = scalar_lea.vmem (!%p1670_p3), [#allocation2], %s1812_s19 }
  0x62   : > { %1532 = dma.done.wait (%p1706_p13), %s447_s11, 128  }
  0x63   : > { %1534 = vsyncadd (%p1706_p13), %s447_s11, 4294967168  ;;  %s456_s9 = sand.u32 1, %s1665_s24   ;;  %s460_s15 = scalar_lea.vmem [#allocation5], %s1812_s19 }
  0x64   : > { %s457_s25 = scalar_lea.sflag [#allocation6], %s456_s9 }
  0x65   : > { %1536 = dma.done.wait (%p1706_p13), %s457_s25, 144  }
  0x66   : > { %1538 = vsyncadd (%p1706_p13), %s457_s25, 4294967152  ;;  %s469_s27 = scalar_lea.vmem [#allocation7], %s1809_s23  ;;  %p2002_p3 = scmp.eq.s32.totalorder %s1665_s24, 0 }
  0x68   : > { %1540 = dma.done.wait (%p2002_p3), [#allocation9], 1024   ;;  %p2003_p8 = pmov %p2002_p3 }
  0x69   : > { %p2004_p9 = pmov %p2002_p3 }
  0x6a   : > { %1542 = vsyncadd (%p2003_p8), [#allocation9], 4294966272 }
  0x6b   : > { %1544 = dma.done.wait (%p2004_p9), [#allocation12], 512   ;;  %p2005_p2 = pmov %p2002_p3 }
  0x6c   : > { %v581_v0 = vld [vmem:[#allocation10 + $0x18] sm:$0xff]  ;;  %v580_v1 = vld [vmem:[#allocation10 + $0x10] sm:$0xff]  ;;  %v579_v4 = vld [vmem:[#allocation10 + $0x8] sm:$0xff]  ;;  %vm554_vm0 = vcmask 261120   ;;  %vm614_vm1 = vcmask 130048   ;;  %s1576_s26 = smov 96  }
  0x6d   : > { %1546 = vsyncadd (%p2005_p2), [#allocation12], 4294966784  ;;  %v549_v2 = vld [vmem:[#allocation8 + $0x18] sm:$0xff]  ;;  %601 = vmatpush.msra.mxu1 %v581_v0  ;;  %v548_v3 = vld [vmem:[#allocation8 + $0x10] sm:$0xff]  ;;  %s1577_s30 = smov 112   ;;  %s1578_s29 = smov 80  }
  0x6e   : > { %570 = vmatpush.msra.mxu0 %v549_v2  ;;  %v547_v5 = vld [vmem:[#allocation8 + $0x8] sm:$0xff]  ;;  %v578_v6 = vld [vmem:[#allocation10] sm:$0xff]  ;;  %v1240_v10 = vld [vmem:[%s1959_s6] ss:$0 sm:$0xff]  ;;  %s1110_s3 = sshll.u32 %s1809_s23, 4  ;;  %vm641_vm2 = vcmask 64512  }
  0x6f   : > { %602 = vmatpush.msra.mxu1 %v580_v1  ;;  %v546_v7 = vld [vmem:[#allocation8] sm:$0xff]  ;;  %v544_v8 = vld [vmem:[%s460_s15] sm:$0xff]  ;;  %v1241_v11 = vld [vmem:[%s1957_s4] ss:$0 sm:$0xff]  ;;  %s1850_s28 = scalar_lea.vmem [#allocation16], %s1110_s3  ;;  %s1864_s14 = scalar_lea.vmem [#allocation14], %s1110_s3 }
  0x70   : > { %571 = vmatpush.msra.mxu0 %v548_v3  ;;  %v543_v9 = vld [vmem:[%s450_s10] sm:$0xff]  ;;  %v774_v56 = vld [vmem:[#allocation11 + $0x10] sm:$0xff]  ;;  %s869_s1 = sshll.u32 %s1864_s14, 4  ;;  %s886_s17 = sshll.u32 %s1850_s28, 4  ;;  %s870_s1 = int_to_ptr.vmem [resolvable:$true] %s869_s1  ;;  %s887_s17 = int_to_ptr.vmem [resolvable:$true] %s886_s17 }
  0x71   : > { %603 = vmatpush.msra.mxu1 %v579_v4  ;;  %v545_v17 = vld [vmem:[%s469_s27] sm:$0x1]  ;;  %v693_v31 = vld [vmem:[#allocation11 + $0x8] sm:$0xff]  ;;  %v692_v45 = vld [vmem:[#allocation11] sm:$0xff]  ;;  %s1134_s8 = sshll.u32 %s1665_s24, 4  ;;  %s2006_s25 = sld [smem:[#allocation32_spill]] }
  0x72   : > { %572 = vmatpush.msra.mxu0 %v547_v5  ;;  %v609_v19 = vsub.f32 1.0, %v545_v17  ;;  %v775_v55 = vld [vmem:[#allocation11 + $0x18] sm:$0xff]  ;;  %s2007_s13 = sld [smem:[#allocation33_spill]] }
  0x73   : > { %604 = vmatpush.msra.mxu1 %v578_v6 }
  0x74   : > { %573 = vmatpush.msra.mxu0 %v546_v7  ;;  %1113 = vmatmul.msk.f32.vlgmr.msra.gmra.mxu1 %vm554_vm0, %v544_v8  ;;  %v610_v20 = vmul.f32 -10000.0, %v609_v19 }
  0x75   : > { %1112 = vmatmul.msk.f32.vlgmr.msra.gmra.mxu0 %vm554_vm0, %v543_v9  ;;  %816 = vmatpush.msrb.mxu1 %v693_v31 }
  0x76   : > { %v612_v22 = vperm.slane %v610_v20, 0  ;;  %793 = vmatpush.msrb.mxu0 %v775_v55 }
  0x77   : > { %817 = vmatpush.msrb.mxu1 %v692_v45  ;;  %s868_s15 = scalar_lea.hbm %s2006_s25, %s1134_s8  ;;  %s1451_s11 = scalar_lea.hbm %s2006_s25, 32 }
  0x78   : > { %794 = vmatpush.msrb.mxu0 %v774_v56  ;;  %s871_s27 = sshll.u32 %s868_s15, 4  ;;  %s885_s16 = scalar_lea.hbm %s2007_s13, %s1134_s8  ;;  %s872_s27 = int_to_ptr.hbm [resolvable:$true] %s871_s27 }
  0xf1   : > { %v606_v12 = vpop.f32.mrf.mxu1 }
  0xf2   : > { %v575_v13 = vpop.f32.mrf.mxu0  ;;  %v607_v14 = vadd.f32 %v1240_v10, %v606_v12 }
  0xf3   : > { %v576_v15 = vadd.f32 %v1241_v11, %v575_v13 }
  0xf4   : > { %666 = vrot.lane.b32.xlu1 %v607_v14, %s1576_s26  ;;  %1114 = vmatpush.xpose.msk.msra.mxu2 %vm614_vm1, %v607_v14  ;;  %s1887_s26 = scalar_lea.sflag [#allocation15], %s456_s9 }
  0xf5   : > { %696 = vrot.lane.b32.xlu2 %v576_v15, %s1577_s30 }
  0xf7   : > { %1115 = vmatmul.msk.f32.vlgmr.msra.gmra.mxu2 %vm614_vm1, %v576_v15 }
  0xfc   : > { %698 = vrot.lane.b32.xlu1 %v607_v14, %s1577_s30  ;;  %s1445_s30 = sshra.s32 %s872_s27, 4  ;;  %s1446_s30 = int_to_ptr.hbm [resolvable:$true] %s1445_s30 }
  0xfd   : > { %p1452_p7 = scmp.lt.s32.totalorder %s1446_s30, %s2006_s25 }
 0x104   : > { %748 = vrot.lane.b32.xlu1 %v607_v14, %s1578_s29  ;;  %s1447_s29 = scalar_lea.hbm %s1446_s30, 16 }
 0x105   : > { %p1448_p13 = scmp.ne.s32.totalorder %s1446_s30, %s1447_s29  ;;  %p1453_p10 = scmp.lt.s32.totalorder %s1451_s11, %s1447_s29 }
 0x107   : > { %p1449_p4 = pnand %p1448_p13, %p1710_p0  ;;  %p1454_p6 = por %p1453_p10, %p1452_p7 }
 0x109   : > { %p1450_p1 = pneg %p1449_p4 }
 0x10b   : > { %p1455_p11 = pnand %p1454_p6, %p1450_p1 }
 0x14f   : > { %v697_v44 = vpop.permute.xlu2 %696 }
 0x166   : > { %v667_v16 = vpop.permute.xlu1 %666 }
 0x167   : > { %695 = vst.msk [vmem:[%s1850_s28] sm:$0xff] %vm614_vm1, %v667_v16  ;;  %687 = vmatpush.msra.mxu3 %v667_v16 }
 0x16e   : > { %v699_v18 = vpop.permute.xlu1 %698 }
 0x16f   : > { %1117 = vmatpush.xpose.msk.msrb.mxu3 %vm614_vm1, %v699_v18 }
 0x176   : > { %v749_v21 = vpop.permute.xlu1 %748 }
 0x177   : > { %1123 = vst.msk [vmem:[%s1850_s28 + $0x8] sm:$0xff] %vm614_vm1, %v749_v21  ;;  %769 = vmatpush.msrb.mxu2 %v749_v21 }
 0x17a   : > { %v638_v23 = vpop.f32.mrf.mxu2 }
 0x17b   : > { %v639_v24 = vadd.f32 %v638_v23, %v612_v22 }
 0x17d   : > { %v642_v25 = vsel %vm641_vm2, %v639_v24, -inf }
 0x17e   : > { %643 = vmax.xlane.f32.xlu0 %v642_v25 }
 0x1f1   : > { %v644_v26 = vpop.xlane.xlu0 %643 }
 0x1f2   : > { %v645_v27 = vsub.f32 %v639_v24, %v644_v26 }
 0x1f4   : > { %v646_v28 = vmul.f32 1.442695, %v645_v27 }
 0x1f6   : > { %1243 = vpow2.f32 %v646_v28 }
 0x1fc   : > { %v1244_v29 = vpop.eup %1243 }
 0x1fd   : > { %v648_v30 = vsel %vm641_vm2, %v1244_v29, 0.0 }
 0x1fe   : > { %649 = vadd.xlane.f32.xlu0 %v648_v30 }
 0x271   : > { %v650_v32 = vpop.xlane.xlu0 %649 }
 0x272   : > { %1245 = vrcp.f32 %v650_v32  ;;  %v662_v36 = vand.u32 2147483648, %v650_v32  ;;  %v660_v38 = vand.u32 2147483647, %v650_v32  ;;  %vm656_vm4 = vweird.f32 %v650_v32 }
 0x274   : > { %v663_v40 = vor.u32 1.1754944e-38, %v662_v36  ;;  %vm661_vm6 = vcmp.eq.f32.partialorder %v660_v38, 8.507059e+37 }
 0x278   : > { %v1246_v33 = vpop.eup %1245 }
 0x279   : > { %v652_v34 = vmul.f32 %v1246_v33, %v650_v32  ;;  %vm657_vm3 = vweird.f32 %v1246_v33 }
 0x27a   : > { %vm658_vm5 = vmor %vm656_vm4, %vm657_vm3 }
 0x27b   : > { %v653_v35 = vsub.f32 1.0, %v652_v34 }
 0x27d   : > { %v654_v37 = vmul.f32 %v1246_v33, %v653_v35 }
 0x27f   : > { %v655_v39 = vadd.f32 %v1246_v33, %v654_v37 }
 0x281   : > { %v659_v41 = vsel %vm658_vm5, %v1246_v33, %v655_v39 }
 0x282   : > { %v664_v42 = vsel %vm661_vm6, %v663_v40, %v659_v41 }
 0x283   : > { %v665_v43 = vmul.f32 %v1244_v29, %v664_v42 }
 0x285   : > { %1116 = vmatmul.msk.f32.vlgmr.msra.gmra.mxu3 %vm641_vm2, %v665_v43  ;;  %694 = vst.msk [vmem:[%s1864_s14] sm:$0xff] %vm641_vm2, %v665_v43 }
 0x28d   : > { %1118 = vmatmul.msk.f32.vlgmr.msrb.gmra.mxu3 %vm614_vm1, %v697_v44 }
 0x308   : > { %v689_v46 = vpop.f32.mrf.mxu3 }
 0x309   : > { %1121 = vmatmul.msk.f32.vlgmr.msrb.gmra.mxu1 %vm614_vm1, %v689_v46 }
 0x310   : > { %v721_v47 = vpop.f32.mrf.mxu3 }
 0x311   : > { %v722_v48 = vadd.f32 %v721_v47, %v612_v22 }
 0x313   : > { %v724_v49 = vsel %vm641_vm2, %v722_v48, -inf }
 0x314   : > { %725 = vmax.xlane.f32.xlu2 %v724_v49 }
 0x387   : > { %v726_v50 = vpop.xlane.xlu2 %725 }
 0x388   : > { %v727_v51 = vsub.f32 %v722_v48, %v726_v50 }
 0x38a   : > { %v728_v52 = vmul.f32 1.442695, %v727_v51 }
 0x38c   : > { %1247 = vpow2.f32 %v728_v52 }
 0x392   : > { %v1248_v53 = vpop.eup %1247 }
 0x393   : > { %v730_v54 = vsel %vm641_vm2, %v1248_v53, 0.0 }
 0x394   : > { %731 = vadd.xlane.f32.xlu0 %v730_v54 }
 0x407   : > { %v732_v57 = vpop.xlane.xlu0 %731 }
 0x408   : > { %1249 = vrcp.f32 %v732_v57  ;;  %v744_v61 = vand.u32 2147483648, %v732_v57  ;;  %v742_v63 = vand.u32 2147483647, %v732_v57  ;;  %vm738_vm8 = vweird.f32 %v732_v57 }
 0x40a   : > { %v745_v1 = vor.u32 1.1754944e-38, %v744_v61  ;;  %vm743_vm10 = vcmp.eq.f32.partialorder %v742_v63, 8.507059e+37 }
 0x40e   : > { %v1250_v58 = vpop.eup %1249 }
 0x40f   : > { %v734_v59 = vmul.f32 %v1250_v58, %v732_v57  ;;  %vm739_vm7 = vweird.f32 %v1250_v58 }
 0x410   : > { %vm740_vm9 = vmor %vm738_vm8, %vm739_vm7 }
 0x411   : > { %v735_v60 = vsub.f32 1.0, %v734_v59 }
 0x413   : > { %v736_v62 = vmul.f32 %v1250_v58, %v735_v60 }
 0x415   : > { %v737_v0 = vadd.f32 %v1250_v58, %v736_v62 }
 0x417   : > { %v741_v2 = vsel %vm740_vm9, %v1250_v58, %v737_v0 }
 0x418   : > { %v746_v3 = vsel %vm743_vm10, %v745_v1, %v741_v2 }
 0x419   : > { %v747_v4 = vmul.f32 %v1248_v53, %v746_v3 }
 0x41b   : > { %1119 = vmatmul.msk.f32.vlgmr.msrb.gmra.mxu2 %vm641_vm2, %v747_v4  ;;  %1122 = vst.msk [vmem:[%s1864_s14 + $0x8] sm:$0xff] %vm641_vm2, %v747_v4 }
 0x49e   : > { %v771_v5 = vpop.f32.mrf.mxu2 }
 0x49f   : > { %1120 = vmatmul.msk.f32.vlgmr.msrb.gmra.mxu0 %vm614_vm1, %v771_v5 }
 0x4a0   : > { %1458 = shalt.err (!%p1455_p11)
}
 0x4a1   : > { %s1579_s9 = smov 128   ;;  %s1580_s8 = smov 8  }
 0x4a2   : > { %1155 = dma.vmem_to_hbm [thread:$0]  (%p1710_p0), %s870_s1, 256, %s872_s27, %s1887_s26, %s1579_s9, %s1579_s9, %s1580_s8  }
 0x4a3   : > { %s888_s21 = sshll.u32 %s885_s16, 4  ;;  %s1479_s14 = scalar_lea.hbm %s2007_s13, 32  ;;  %s889_s21 = int_to_ptr.hbm [resolvable:$true] %s888_s21 }
 0x4a4   : > { %s1473_s12 = sshra.s32 %s889_s21, 4  ;;  %s1474_s12 = int_to_ptr.hbm [resolvable:$true] %s1473_s12 }
 0x4a5   : > { %s1475_s3 = scalar_lea.hbm %s1474_s12, 16  ;;  %p1480_p9 = scmp.lt.s32.totalorder %s1474_s12, %s2007_s13 }
 0x4a6   : > { %p1476_p12 = scmp.ne.s32.totalorder %s1474_s12, %s1475_s3  ;;  %p1481_p2 = scmp.lt.s32.totalorder %s1479_s14, %s1475_s3 }
 0x4a8   : > { %p1477_p3 = pnand %p1476_p12, %p1710_p0  ;;  %p1482_p13 = por %p1481_p2, %p1480_p9 }
 0x4aa   : > { %p1478_p8 = pneg %p1477_p3 }
 0x4ac   : > { %p1483_p4 = pnand %p1482_p13, %p1478_p8 }
 0x4ae   : > { %1486 = shalt.err (!%p1483_p4)
}
 0x4af   : > { %1156 = dma.vmem_to_hbm [thread:$0]  (%p1710_p0), %s887_s17, 256, %s889_s21, %s1887_s26, %s1579_s9, %s1579_s9, %s1580_s8   ;;  %v819_v7 = vpop.f32.mrf.mxu1 }
 0x4b0   : > { %s1127_s28 = sshll.u32 %s1665_s24, 3  ;;  %s2008_s16 = sld [smem:[#allocation31_spill]] }
 0x4b1   : > { %s2009_s11 = sld [smem:[#allocation30_spill]]  ;;  %s528_s12 = scalar_lea.vmem [#allocation13], %s1812_s19 }
 0x4b2   : > { %s855_s3 = sshll.u32 %s528_s12, 4  ;;  %s833_s24 = scalar_lea.sflag [#allocation4], %s1809_s23  ;;  %s856_s3 = int_to_ptr.vmem [resolvable:$true] %s855_s3 }
 0x4b6   : > { %s853_s15 = scalar_lea.hbm %s2008_s16, %s1127_s28  ;;  %s1507_s19 = scalar_lea.hbm %s2008_s16, 16 }
 0x4b7   : > { %v1242_v6 = vld [vmem:[%s2009_s11] ss:$0 sm:$0xff]  ;;  %s857_s14 = sshll.u32 %s853_s15, 4  ;;  %s858_s14 = int_to_ptr.hbm [resolvable:$true] %s857_s14 }
 0x4b8   : > { %s1501_s17 = sshra.s32 %s858_s14, 4  ;;  %s1502_s17 = int_to_ptr.hbm [resolvable:$true] %s1501_s17 }
 0x4b9   : > { %s1503_s26 = scalar_lea.hbm %s1502_s17, 8  ;;  %p1508_p6 = scmp.lt.s32.totalorder %s1502_s17, %s2008_s16 }
 0x4ba   : > { %p1504_p1 = scmp.ne.s32.totalorder %s1502_s17, %s1503_s26  ;;  %p1509_p11 = scmp.lt.s32.totalorder %s1507_s19, %s1503_s26 }
 0x4bc   : > { %p1505_p7 = pnand %p1504_p1, %p1710_p0  ;;  %p1510_p12 = por %p1509_p11, %p1508_p6 }
 0x4be   : > { %p1506_p10 = pneg %p1505_p7 }
 0x4c0   : > { %p1511_p3 = pnand %p1510_p12, %p1506_p10 }
 0x51c   : > { %v796_v8 = vpop.f32.mrf.mxu0 }
 0x51d   : > { %v820_v9 = vadd.f32 %v819_v7, %v796_v8 }
 0x51f   : > { %v830_v10 = vadd.f32 %v1242_v6, %v820_v9 }
 0x521   : > { %831 = vst.msk [vmem:[%s528_s12] sm:$0xff] %vm554_vm0, %v830_v10 }
 0x522   : > { %1514 = shalt.err (!%p1511_p3)
}
 0x523   : > { %1154 = dma.vmem_to_hbm [thread:$0]  (%p1710_p0), %s856_s3, 128, %s858_s14, %s833_s24  }
 0x524 PF: > { %s2010_s23 = sld [smem:[#allocation23_spill]]  ;;  %p2012_p8 = scmp.ge.s32.totalorder %s1569_s20, 2 }
 0x526   : > { %p1181_p9 = pnand %p2012_p8, %p1720_p5 }
 0x528   : > { %p1182_p2 = pneg %p1181_p9 }
 0x52a   : > { %s903_s1 = sand.u32 1, %s2010_s23  }
 0x52b   : > { %s904_s27 = scalar_lea.sflag [#allocation4], %s903_s1 }
 0x52c   : > { %1548 = dma.done.wait (%p1182_p2), %s904_s27, 128  }
 0x52d   : > { %1550 = vsyncadd (%p1182_p2), %s904_s27, 4294967168  ;;  %s2013_s15 = sadd.s32 4294967294, %s1569_s20  }
 0x52e   : > { %s913_s30 = sand.u32 1, %s2013_s15  }
 0x52f   : > { %s914_s29 = scalar_lea.sflag [#allocation15], %s913_s30 }
 0x530   : > { %1552 = dma.done.wait (%p1182_p2), %s914_s29, 512  }
 0x531   : > { %1554 = vsyncadd (%p1182_p2), %s914_s29, 4294966784  ;;  %s2014_s20 = sld [smem:[#allocation25_spill]]  ;;  %s2017_s17 = smov %s1561_s18 }
 0x532   : > { %s2015_s22 = sld [smem:[#allocation24_spill]] }
 0x533   : > { %s2016_s19 = sld [smem:[#allocation26_spill]] }
 0x537   : > { %p33_p0 = scmp.ge.s32.totalorder %s2014_s20, 4  }
 0x538   : > { %s2018_s18 = smov %s2015_s22 }
 0x539   :  { %35 = sbr.rel (!%p33_p0) target bundleno = 18 (0x12), region = 171 }
 0x53e   :  { %930 = vsyncpa [#allocation3], 1 }
 0x53f   :  { %932 = vsyncpa [#allocation3 + $0x1], 1 }
 0x540   :  { %933 = vsyncpa [#allocation6], 1 }
 0x541   :  { %935 = vsyncpa [#allocation6 + $0x1], 1 }
 0x542   :  { %936 = vsyncpa [#allocation9], 1 }
 0x543   :  { %937 = vsyncpa [#allocation12], 1 }
 0x544   :  { %938 = vsyncpa [#allocation4], 1 }
 0x545   :  { %940 = vsyncpa [#allocation4 + $0x1], 1 }
 0x546   :  { %941 = vsyncpa [#allocation15], 1 }
 0x547   :  { %943 = vsyncpa [#allocation15 + $0x1], 1 }

</bundles_post_ra>
